<compile_context>
chip_gen: v6e
topology: v6e:2x2x1
jax: 0.10.0
libtpu: 0.0.40
codegen_flags: <defaults>
</compile_context>

<pallas_src>
import functools

import numpy as np
import jax
import jax.numpy as jnp
from jax.experimental import pallas as pl
from jax.experimental.pallas import tpu as pltpu

EPS = 1e-5


def _make_tap_masks(H, W):
    """(9, H*W) f32 validity multipliers for the 3x3 taps (emulates zero padding).

    Pure numpy => a true compile-time constant, hoisted out of the kernel."""
    r, c = np.divmod(np.arange(H * W), W)
    masks = []
    for dy in (-1, 0, 1):
        for dx in (-1, 0, 1):
            masks.append((r + dy >= 0) & (r + dy < H) & (c + dx >= 0) & (c + dx < W))
    return np.stack(masks).astype(np.float32)


def residual_block_kernel(x_ref, w_ref, mask_ref, params_ref, out_ref, slab_ref, *, W):
    """One sample per grid step, lane-dense (C, H*W) layout.

    x_ref      : (C, HW)      f32 VMEM   activation (one sample)
    w_ref      : (2C, 9C)     f32 VMEM   [conv1 ; conv2] fused tap-major weights
    mask_ref   : (9, HW)      f32 VMEM   per-tap boundary multipliers (constants)
    params_ref : (C, 4)       f32 VMEM   columns = [gamma1, beta1, gamma2, beta2]
    out_ref    : (C, HW)      f32 VMEM
    slab_ref   : (9C, HW)     f32 VMEM scratch  shifted-tap slab (reused by both convs)
    """
    C, HW = x_ref.shape
    inv_hw = 1.0 / HW

    def conv3x3(v, w):
        # 3x3 conv (stride 1, pad 1) as ONE K = 9*C MXU matmul.
        # Build the 9 shifted views with pltpu.roll (XLU): 2 row rolls reused by
        # +/-1 column rolls; wrap-around positions are exactly the out-of-bounds
        # taps and are zeroed by the precomputed masks (== zero padding).
        rows = {
            -1: pltpu.roll(v, W, axis=1),        # rows[-1][p] = v[p - W]
            0: v,
            1: pltpu.roll(v, HW - W, axis=1),    # rows[+1][p] = v[p + W]
        }
        tap = 0
        for dy in (-1, 0, 1):
            r = rows[dy]
            for dx in (-1, 0, 1):
                s = r if dx == 0 else pltpu.roll(r, (-dx) % HW, axis=1)  # s[p] = r[p+dx]
                if tap != 4:                                  # center tap: all valid
                    s = s * mask_ref[pl.ds(tap, 1), :]
                slab_ref[pl.ds(tap * C, C), :] = s            # stack along sublanes
                tap += 1
        # DEFAULT precision => fast bf16 MXU path (per perf review).
        return jnp.dot(w, slab_ref[...], preferred_element_type=jnp.float32)

    def bin_norm(acc, g, b):
        # MyBatchInstanceNorm for one sample (batch stats == instance stats at N==1):
        # single-pass sum & sum-of-squares, biased variance, rsqrt on the EUP,
        # gamma folded into the scale so the full-width math is one multiply-add.
        mu = jnp.sum(acc, axis=-1, keepdims=True) * inv_hw
        ex2 = jnp.sum(acc * acc, axis=-1, keepdims=True) * inv_hw
        var = ex2 - mu * mu
        scale = jax.lax.rsqrt(var + EPS) * g
        return acc * scale + (b - mu * scale)

    x = x_ref[...]                              # (C, HW)
    p = params_ref[...]                         # (C, 4)
    w1 = w_ref[pl.ds(0, C), :]                  # (C, 9C)
    w2 = w_ref[pl.ds(C, C), :]                  # (C, 9C)

    # conv1 -> norm -> ReLU
    h1 = jnp.maximum(bin_norm(conv3x3(x, w1), p[:, 0:1], p[:, 1:2]), 0.0)
    # conv2 -> norm -> identity shortcut -> ReLU
    y = bin_norm(conv3x3(h1, w2), p[:, 2:3], p[:, 3:4])
    out_ref[...] = jnp.maximum(y + x, 0.0)


@jax.jit
def residual_block(x, w1, w2, gamma1, beta1, gamma2, beta2):
    """x: (N, C, H, W) NCHW f32. Each sample is one grid step (exact N==1 module
    semantics per sample; the PyTorch module itself only type-checks for N==1)."""
    N, C, H, W = map(int, x.shape)
    C_out, C_in = int(w1.shape[0]), int(w1.shape[1])
    assert C_in == C and C_out == C and tuple(w1.shape[2:]) == (3, 3), \
        "identity shortcut requires in_channels == out_channels and stride == 1"
    HW = H * W
    assert HW % 128 == 0, "lane-dense layout wants H*W to be a multiple of 128"

    # Lane-dense activations: (N, C, H*W) with H*W on the lane axis.
    x_flat = x.reshape(N, C, HW).astype(jnp.float32)

    # Fused tap-major weights for the single K=9*C matmul:
    #   w_flat[o, (ky*3 + kx)*C + i] = w[o, i, ky, kx]
    # Both convs stacked along sublanes into ONE (2C, 9C) input (one VMEM tile).
    def flat(w):
        return jnp.transpose(w.astype(jnp.float32), (0, 2, 3, 1)).reshape(C, 9 * C)
    w_both = jnp.concatenate([flat(w1), flat(w2)], axis=0)            # (2C, 9C)

    # gamma/beta consolidated into one (C, 4) input: columns [g1, b1, g2, b2].
    params = jnp.stack(
        [gamma1.reshape(C), beta1.reshape(C), gamma2.reshape(C), beta2.reshape(C)],
        axis=1).astype(jnp.float32)

    masks = jnp.asarray(_make_tap_masks(H, W))                        # (9, HW) const

    kernel = functools.partial(residual_block_kernel, W=W)
    out = pl.pallas_call(
        kernel,
        out_shape=jax.ShapeDtypeStruct((N, C, HW), jnp.float32),
        grid_spec=pltpu.PrefetchScalarGridSpec(
            num_scalar_prefetch=0,
            grid=(N,),                                                # amortize launch
            in_specs=[
                pl.BlockSpec((None, C, HW), lambda n: (n, 0, 0)),     # per-sample tile
                pl.BlockSpec((2 * C, 9 * C), lambda n: (0, 0)),       # fused weights
                pl.BlockSpec((9, HW), lambda n: (0, 0)),              # tap masks
                pl.BlockSpec((C, 4), lambda n: (0, 0)),               # gamma / beta
            ],
            out_specs=pl.BlockSpec((None, C, HW), lambda n: (n, 0, 0)),
            scratch_shapes=[pltpu.VMEM((9 * C, HW), jnp.float32)],    # shifted-tap slab
        ),
        compiler_params=pltpu.CompilerParams(
            dimension_semantics=("parallel",),                        # 2 TCs on v7x
        ),
    )(x_flat, w_both, masks, params)
    return out.reshape(N, C, H, W)


# ----- pure-JAX reference (ground truth for the correctness check) -----
def _reference(x, w1, w2, g1, b1, g2, b2):
    def conv3x3(inp, w):
        return jax.lax.conv_general_dilated(
            inp, w, window_strides=(1, 1), padding=((1, 1), (1, 1)),
            dimension_numbers=("NCHW", "OIHW", "NCHW"),
            precision=jax.lax.Precision.HIGHEST)

    def bin_norm(y, g, b):
        mu = y.mean(axis=(2, 3), keepdims=True)
        var = y.var(axis=(2, 3), keepdims=True)      # ddof=0 == unbiased=False
        return (y - mu) / jnp.sqrt(var + EPS) * g + b

    out = jnp.maximum(bin_norm(conv3x3(x, w1), g1, b1), 0.0)
    out = bin_norm(conv3x3(out, w2), g2, b2)
    return jnp.maximum(out + x, 0.0)                 # identity shortcut + ReLU


if __name__ == "__main__":
    # stride=1, in_channels == out_channels => identity shortcut.
    N, C, H, W = 2, 4, 16, 16

    key = jax.random.PRNGKey(0)
    kx, k1, k2 = jax.random.split(key, 3)

    x = jax.random.normal(kx, (N, C, H, W), dtype=jnp.float32)
    # deterministic parameter init (shapes per nn.Conv2d / MyBatchInstanceNorm __init__)
    w1 = 0.2 * jax.random.normal(k1, (C, C, 3, 3), dtype=jnp.float32)   # conv1.weight
    w2 = 0.2 * jax.random.normal(k2, (C, C, 3, 3), dtype=jnp.float32)   # conv2.weight
    gamma1 = jnp.ones((1, C, 1, 1), jnp.float32)   # bn1.weight
    beta1 = jnp.zeros((1, C, 1, 1), jnp.float32)   # bn1.bias
    gamma2 = jnp.ones((1, C, 1, 1), jnp.float32)   # bn2.weight
    beta2 = jnp.zeros((1, C, 1, 1), jnp.float32)   # bn2.bias

    out = jax.block_until_ready(residual_block(x, w1, w2, gamma1, beta1, gamma2, beta2))
    ref = _reference(x, w1, w2, gamma1, beta1, gamma2, beta2)

    assert out.shape == (N, C, H, W)
    # Kernel uses DEFAULT-precision (bf16-path) MXU matmuls per the perf review,
    # compared against a HIGHEST-precision reference: tolerance re-set accordingly.
    err = float(jnp.max(jnp.abs(out - ref)))
    assert jnp.allclose(out, ref, atol=5e-2, rtol=5e-2), err

    print("KERNEL_OK")
</pallas_src>

<mosaic_0001>
module attributes {stable_mosaic.version = 11 : i64} {
  func.func @residual_block_kernel(%arg0: i32, %arg1: memref<1x4x256xf32, #tpu.memory_space<vmem>>, %arg2: memref<8x36xf32, #tpu.memory_space<vmem>>, %arg3: memref<9x256xf32, #tpu.memory_space<vmem>>, %arg4: memref<4x4xf32, #tpu.memory_space<vmem>>, %arg5: memref<1x4x256xf32, #tpu.memory_space<vmem>>, %arg6: memref<36x256xf32, #tpu.memory_space<vmem>>) attributes {dimension_semantics = [#tpu.dimension_semantics<parallel>], iteration_bounds = array<i64: 2>, scalar_prefetch = 0 : i64, scratch_operands = 1 : i64, tpu.core_type = #tpu.core_type<tc>, window_params = [{transform_indices = @transform_0, window_bounds = array<i64: 1, 4, 256>}, {pipeline_mode = #tpu.pipeline_mode<synchronous>, transform_indices = @transform_1, window_bounds = array<i64: 8, 36>}, {pipeline_mode = #tpu.pipeline_mode<synchronous>, transform_indices = @transform_2, window_bounds = array<i64: 9, 256>}, {pipeline_mode = #tpu.pipeline_mode<synchronous>, transform_indices = @transform_3, window_bounds = array<i64: 4, 4>}, {transform_indices = @transform_4, window_bounds = array<i64: 1, 4, 256>}]} {
    %c0 = arith.constant 0 : index
    %c0_0 = arith.constant 0 : index
    %c0_1 = arith.constant 0 : index
    %0 = vector.load %arg1[%c0, %c0_0, %c0_1] : memref<1x4x256xf32, #tpu.memory_space<vmem>>, vector<1x4x256xf32>
    %1 = vector.shape_cast %0 : vector<1x4x256xf32> to vector<4x256xf32>
    %c0_2 = arith.constant 0 : index
    %c0_3 = arith.constant 0 : index
    %2 = vector.load %arg4[%c0_2, %c0_3] : memref<4x4xf32, #tpu.memory_space<vmem>>, vector<4x4xf32>
    %c0_4 = arith.constant 0 : index
    %c0_5 = arith.constant 0 : index
    %3 = vector.load %arg2[%c0_4, %c0_5] : memref<8x36xf32, #tpu.memory_space<vmem>>, vector<4x36xf32>
    %c4 = arith.constant 4 : index
    %c0_6 = arith.constant 0 : index
    %4 = vector.load %arg2[%c4, %c0_6] : memref<8x36xf32, #tpu.memory_space<vmem>>, vector<4x36xf32>
    %c16_i32 = arith.constant 16 : i32
    %5 = tpu.dynamic_rotate %1 by %c16_i32 dim 1 : vector<4x256xf32>, i32 -> vector<4x256xf32>
    %c240_i32 = arith.constant 240 : i32
    %6 = tpu.dynamic_rotate %1 by %c240_i32 dim 1 : vector<4x256xf32>, i32 -> vector<4x256xf32>
    %c1_i32 = arith.constant 1 : i32
    %7 = tpu.dynamic_rotate %5 by %c1_i32 dim 1 : vector<4x256xf32>, i32 -> vector<4x256xf32>
    %c0_7 = arith.constant 0 : index
    %c0_8 = arith.constant 0 : index
    %8 = vector.load %arg3[%c0_7, %c0_8] : memref<9x256xf32, #tpu.memory_space<vmem>>, vector<1x256xf32>
    %9 = vector.broadcast %8 : vector<1x256xf32> to vector<4x256xf32>
    %10 = arith.mulf %7, %9 : vector<4x256xf32>
    %c0_9 = arith.constant 0 : index
    %c0_10 = arith.constant 0 : index
    %11 = vector.load %arg6[%c0_9, %c0_10] : memref<36x256xf32, #tpu.memory_space<vmem>>, vector<4x256xf32>
    tpu.vector_store %arg6[%c0_9, %c0_10], %10 {strides = array<i32>} : memref<36x256xf32, #tpu.memory_space<vmem>>, vector<4x256xf32>,
    %c1 = arith.constant 1 : index
    %c0_11 = arith.constant 0 : index
    %12 = vector.load %arg3[%c1, %c0_11] : memref<9x256xf32, #tpu.memory_space<vmem>>, vector<1x256xf32>
    %13 = vector.broadcast %12 : vector<1x256xf32> to vector<4x256xf32>
    %14 = arith.mulf %5, %13 : vector<4x256xf32>
    %c4_12 = arith.constant 4 : index
    %c0_13 = arith.constant 0 : index
    %15 = vector.load %arg6[%c4_12, %c0_13] : memref<36x256xf32, #tpu.memory_space<vmem>>, vector<4x256xf32>
    tpu.vector_store %arg6[%c4_12, %c0_13], %14 {strides = array<i32>} : memref<36x256xf32, #tpu.memory_space<vmem>>, vector<4x256xf32>,
    %c255_i32 = arith.constant 255 : i32
    %16 = tpu.dynamic_rotate %5 by %c255_i32 dim 1 : vector<4x256xf32>, i32 -> vector<4x256xf32>
    %c2 = arith.constant 2 : index
    %c0_14 = arith.constant 0 : index
    %17 = vector.load %arg3[%c2, %c0_14] : memref<9x256xf32, #tpu.memory_space<vmem>>, vector<1x256xf32>
    %18 = vector.broadcast %17 : vector<1x256xf32> to vector<4x256xf32>
    %19 = arith.mulf %16, %18 : vector<4x256xf32>
    %c8 = arith.constant 8 : index
    %c0_15 = arith.constant 0 : index
    %20 = vector.load %arg6[%c8, %c0_15] : memref<36x256xf32, #tpu.memory_space<vmem>>, vector<4x256xf32>
    tpu.vector_store %arg6[%c8, %c0_15], %19 {strides = array<i32>} : memref<36x256xf32, #tpu.memory_space<vmem>>, vector<4x256xf32>,
    %c1_i32_16 = arith.constant 1 : i32
    %21 = tpu.dynamic_rotate %1 by %c1_i32_16 dim 1 : vector<4x256xf32>, i32 -> vector<4x256xf32>
    %c3 = arith.constant 3 : index
    %c0_17 = arith.constant 0 : index
    %22 = vector.load %arg3[%c3, %c0_17] : memref<9x256xf32, #tpu.memory_space<vmem>>, vector<1x256xf32>
    %23 = vector.broadcast %22 : vector<1x256xf32> to vector<4x256xf32>
    %24 = arith.mulf %21, %23 : vector<4x256xf32>
    %c12 = arith.constant 12 : index
    %c0_18 = arith.constant 0 : index
    %25 = vector.load %arg6[%c12, %c0_18] : memref<36x256xf32, #tpu.memory_space<vmem>>, vector<4x256xf32>
    tpu.vector_store %arg6[%c12, %c0_18], %24 {strides = array<i32>} : memref<36x256xf32, #tpu.memory_space<vmem>>, vector<4x256xf32>,
    %c16 = arith.constant 16 : index
    %c0_19 = arith.constant 0 : index
    %26 = vector.load %arg6[%c16, %c0_19] : memref<36x256xf32, #tpu.memory_space<vmem>>, vector<4x256xf32>
    tpu.vector_store %arg6[%c16, %c0_19], %1 {strides = array<i32>} : memref<36x256xf32, #tpu.memory_space<vmem>>, vector<4x256xf32>,
    %c255_i32_20 = arith.constant 255 : i32
    %27 = tpu.dynamic_rotate %1 by %c255_i32_20 dim 1 : vector<4x256xf32>, i32 -> vector<4x256xf32>
    %c5 = arith.constant 5 : index
    %c0_21 = arith.constant 0 : index
    %28 = vector.load %arg3[%c5, %c0_21] : memref<9x256xf32, #tpu.memory_space<vmem>>, vector<1x256xf32>
    %29 = vector.broadcast %28 : vector<1x256xf32> to vector<4x256xf32>
    %30 = arith.mulf %27, %29 : vector<4x256xf32>
    %c20 = arith.constant 20 : index
    %c0_22 = arith.constant 0 : index
    %31 = vector.load %arg6[%c20, %c0_22] : memref<36x256xf32, #tpu.memory_space<vmem>>, vector<4x256xf32>
    tpu.vector_store %arg6[%c20, %c0_22], %30 {strides = array<i32>} : memref<36x256xf32, #tpu.memory_space<vmem>>, vector<4x256xf32>,
    %c1_i32_23 = arith.constant 1 : i32
    %32 = tpu.dynamic_rotate %6 by %c1_i32_23 dim 1 : vector<4x256xf32>, i32 -> vector<4x256xf32>
    %c6 = arith.constant 6 : index
    %c0_24 = arith.constant 0 : index
    %33 = vector.load %arg3[%c6, %c0_24] : memref<9x256xf32, #tpu.memory_space<vmem>>, vector<1x256xf32>
    %34 = vector.broadcast %33 : vector<1x256xf32> to vector<4x256xf32>
    %35 = arith.mulf %32, %34 : vector<4x256xf32>
    %c24 = arith.constant 24 : index
    %c0_25 = arith.constant 0 : index
    %36 = vector.load %arg6[%c24, %c0_25] : memref<36x256xf32, #tpu.memory_space<vmem>>, vector<4x256xf32>
    tpu.vector_store %arg6[%c24, %c0_25], %35 {strides = array<i32>} : memref<36x256xf32, #tpu.memory_space<vmem>>, vector<4x256xf32>,
    %c7 = arith.constant 7 : index
    %c0_26 = arith.constant 0 : index
    %37 = vector.load %arg3[%c7, %c0_26] : memref<9x256xf32, #tpu.memory_space<vmem>>, vector<1x256xf32>
    %38 = vector.broadcast %37 : vector<1x256xf32> to vector<4x256xf32>
    %39 = arith.mulf %6, %38 : vector<4x256xf32>
    %c28 = arith.constant 28 : index
    %c0_27 = arith.constant 0 : index
    %40 = vector.load %arg6[%c28, %c0_27] : memref<36x256xf32, #tpu.memory_space<vmem>>, vector<4x256xf32>
    tpu.vector_store %arg6[%c28, %c0_27], %39 {strides = array<i32>} : memref<36x256xf32, #tpu.memory_space<vmem>>, vector<4x256xf32>,
    %c255_i32_28 = arith.constant 255 : i32
    %41 = tpu.dynamic_rotate %6 by %c255_i32_28 dim 1 : vector<4x256xf32>, i32 -> vector<4x256xf32>
    %c8_29 = arith.constant 8 : index
    %c0_30 = arith.constant 0 : index
    %42 = vector.load %arg3[%c8_29, %c0_30] : memref<9x256xf32, #tpu.memory_space<vmem>>, vector<1x256xf32>
    %43 = vector.broadcast %42 : vector<1x256xf32> to vector<4x256xf32>
    %44 = arith.mulf %41, %43 : vector<4x256xf32>
    %c32 = arith.constant 32 : index
    %c0_31 = arith.constant 0 : index
    %45 = vector.load %arg6[%c32, %c0_31] : memref<36x256xf32, #tpu.memory_space<vmem>>, vector<4x256xf32>
    tpu.vector_store %arg6[%c32, %c0_31], %44 {strides = array<i32>} : memref<36x256xf32, #tpu.memory_space<vmem>>, vector<4x256xf32>,
    %c0_32 = arith.constant 0 : index
    %c0_33 = arith.constant 0 : index
    %46 = vector.load %arg6[%c0_32, %c0_33] : memref<36x256xf32, #tpu.memory_space<vmem>>, vector<36x256xf32>
    %cst = arith.constant dense<0.000000e+00> : vector<4x256xf32>
    %47 = tpu.matmul %3, %46, %cst {dimension_numbers = #tpu.dot_dimension_numbers<[1], [0], [0], [1], [0, 0, 1, 1], [], []>} : vector<4x36xf32>, vector<36x256xf32>, vector<4x256xf32> -> vector<4x256xf32>
    %48 = vector.extract_strided_slice %2 {offsets = [0, 0], sizes = [4, 1], strides = [1, 1]} : vector<4x4xf32> to vector<4x1xf32>
    %49 = vector.extract_strided_slice %2 {offsets = [0, 1], sizes = [4, 1], strides = [1, 1]} : vector<4x4xf32> to vector<4x1xf32>
    %cst_34 = arith.constant dense<0.000000e+00> : vector<4xf32>
    %50 = vector.multi_reduction <add>, %47, %cst_34 [1] : vector<4x256xf32> to vector<4xf32>
    %51 = vector.shape_cast %50 : vector<4xf32> to vector<4x1xf32>
    %cst_35 = arith.constant 3.906250e-03 : f32
    %52 = vector.broadcast %cst_35 : f32 to vector<4x1xf32>
    %53 = arith.mulf %51, %52 : vector<4x1xf32>
    %54 = arith.mulf %47, %47 : vector<4x256xf32>
    %cst_36 = arith.constant dense<0.000000e+00> : vector<4xf32>
    %55 = vector.multi_reduction <add>, %54, %cst_36 [1] : vector<4x256xf32> to vector<4xf32>
    %56 = vector.shape_cast %55 : vector<4xf32> to vector<4x1xf32>
    %cst_37 = arith.constant 3.906250e-03 : f32
    %57 = vector.broadcast %cst_37 : f32 to vector<4x1xf32>
    %58 = arith.mulf %56, %57 : vector<4x1xf32>
    %59 = arith.mulf %53, %53 : vector<4x1xf32>
    %60 = arith.subf %58, %59 : vector<4x1xf32>
    %cst_38 = arith.constant 9.99999974E-6 : f32
    %61 = vector.broadcast %cst_38 : f32 to vector<4x1xf32>
    %62 = arith.addf %60, %61 : vector<4x1xf32>
    %63 = math.rsqrt %62 : vector<4x1xf32>
    %64 = arith.mulf %63, %48 : vector<4x1xf32>
    %65 = vector.broadcast %64 : vector<4x1xf32> to vector<4x256xf32>
    %66 = arith.mulf %47, %65 : vector<4x256xf32>
    %67 = arith.mulf %53, %64 : vector<4x1xf32>
    %68 = arith.subf %49, %67 : vector<4x1xf32>
    %69 = vector.broadcast %68 : vector<4x1xf32> to vector<4x256xf32>
    %70 = arith.addf %66, %69 : vector<4x256xf32>
    %cst_39 = arith.constant 0.000000e+00 : f32
    %71 = vector.broadcast %cst_39 : f32 to vector<4x256xf32>
    %72 = arith.maximumf %70, %71 : vector<4x256xf32>
    %c16_i32_40 = arith.constant 16 : i32
    %73 = tpu.dynamic_rotate %72 by %c16_i32_40 dim 1 : vector<4x256xf32>, i32 -> vector<4x256xf32>
    %c240_i32_41 = arith.constant 240 : i32
    %74 = tpu.dynamic_rotate %72 by %c240_i32_41 dim 1 : vector<4x256xf32>, i32 -> vector<4x256xf32>
    %c1_i32_42 = arith.constant 1 : i32
    %75 = tpu.dynamic_rotate %73 by %c1_i32_42 dim 1 : vector<4x256xf32>, i32 -> vector<4x256xf32>
    %c0_43 = arith.constant 0 : index
    %c0_44 = arith.constant 0 : index
    %76 = vector.load %arg3[%c0_43, %c0_44] : memref<9x256xf32, #tpu.memory_space<vmem>>, vector<1x256xf32>
    %77 = vector.broadcast %76 : vector<1x256xf32> to vector<4x256xf32>
    %78 = arith.mulf %75, %77 : vector<4x256xf32>
    %c0_45 = arith.constant 0 : index
    %c0_46 = arith.constant 0 : index
    %79 = vector.load %arg6[%c0_45, %c0_46] : memref<36x256xf32, #tpu.memory_space<vmem>>, vector<4x256xf32>
    tpu.vector_store %arg6[%c0_45, %c0_46], %78 {strides = array<i32>} : memref<36x256xf32, #tpu.memory_space<vmem>>, vector<4x256xf32>,
    %c1_47 = arith.constant 1 : index
    %c0_48 = arith.constant 0 : index
    %80 = vector.load %arg3[%c1_47, %c0_48] : memref<9x256xf32, #tpu.memory_space<vmem>>, vector<1x256xf32>
    %81 = vector.broadcast %80 : vector<1x256xf32> to vector<4x256xf32>
    %82 = arith.mulf %73, %81 : vector<4x256xf32>
    %c4_49 = arith.constant 4 : index
    %c0_50 = arith.constant 0 : index
    %83 = vector.load %arg6[%c4_49, %c0_50] : memref<36x256xf32, #tpu.memory_space<vmem>>, vector<4x256xf32>
    tpu.vector_store %arg6[%c4_49, %c0_50], %82 {strides = array<i32>} : memref<36x256xf32, #tpu.memory_space<vmem>>, vector<4x256xf32>,
    %c255_i32_51 = arith.constant 255 : i32
    %84 = tpu.dynamic_rotate %73 by %c255_i32_51 dim 1 : vector<4x256xf32>, i32 -> vector<4x256xf32>
    %c2_52 = arith.constant 2 : index
    %c0_53 = arith.constant 0 : index
    %85 = vector.load %arg3[%c2_52, %c0_53] : memref<9x256xf32, #tpu.memory_space<vmem>>, vector<1x256xf32>
    %86 = vector.broadcast %85 : vector<1x256xf32> to vector<4x256xf32>
    %87 = arith.mulf %84, %86 : vector<4x256xf32>
    %c8_54 = arith.constant 8 : index
    %c0_55 = arith.constant 0 : index
    %88 = vector.load %arg6[%c8_54, %c0_55] : memref<36x256xf32, #tpu.memory_space<vmem>>, vector<4x256xf32>
    tpu.vector_store %arg6[%c8_54, %c0_55], %87 {strides = array<i32>} : memref<36x256xf32, #tpu.memory_space<vmem>>, vector<4x256xf32>,
    %c1_i32_56 = arith.constant 1 : i32
    %89 = tpu.dynamic_rotate %72 by %c1_i32_56 dim 1 : vector<4x256xf32>, i32 -> vector<4x256xf32>
    %c3_57 = arith.constant 3 : index
    %c0_58 = arith.constant 0 : index
    %90 = vector.load %arg3[%c3_57, %c0_58] : memref<9x256xf32, #tpu.memory_space<vmem>>, vector<1x256xf32>
    %91 = vector.broadcast %90 : vector<1x256xf32> to vector<4x256xf32>
    %92 = arith.mulf %89, %91 : vector<4x256xf32>
    %c12_59 = arith.constant 12 : index
    %c0_60 = arith.constant 0 : index
    %93 = vector.load %arg6[%c12_59, %c0_60] : memref<36x256xf32, #tpu.memory_space<vmem>>, vector<4x256xf32>
    tpu.vector_store %arg6[%c12_59, %c0_60], %92 {strides = array<i32>} : memref<36x256xf32, #tpu.memory_space<vmem>>, vector<4x256xf32>,
    %c16_61 = arith.constant 16 : index
    %c0_62 = arith.constant 0 : index
    %94 = vector.load %arg6[%c16_61, %c0_62] : memref<36x256xf32, #tpu.memory_space<vmem>>, vector<4x256xf32>
    tpu.vector_store %arg6[%c16_61, %c0_62], %72 {strides = array<i32>} : memref<36x256xf32, #tpu.memory_space<vmem>>, vector<4x256xf32>,
    %c255_i32_63 = arith.constant 255 : i32
    %95 = tpu.dynamic_rotate %72 by %c255_i32_63 dim 1 : vector<4x256xf32>, i32 -> vector<4x256xf32>
    %c5_64 = arith.constant 5 : index
    %c0_65 = arith.constant 0 : index
    %96 = vector.load %arg3[%c5_64, %c0_65] : memref<9x256xf32, #tpu.memory_space<vmem>>, vector<1x256xf32>
    %97 = vector.broadcast %96 : vector<1x256xf32> to vector<4x256xf32>
    %98 = arith.mulf %95, %97 : vector<4x256xf32>
    %c20_66 = arith.constant 20 : index
    %c0_67 = arith.constant 0 : index
    %99 = vector.load %arg6[%c20_66, %c0_67] : memref<36x256xf32, #tpu.memory_space<vmem>>, vector<4x256xf32>
    tpu.vector_store %arg6[%c20_66, %c0_67], %98 {strides = array<i32>} : memref<36x256xf32, #tpu.memory_space<vmem>>, vector<4x256xf32>,
    %c1_i32_68 = arith.constant 1 : i32
    %100 = tpu.dynamic_rotate %74 by %c1_i32_68 dim 1 : vector<4x256xf32>, i32 -> vector<4x256xf32>
    %c6_69 = arith.constant 6 : index
    %c0_70 = arith.constant 0 : index
    %101 = vector.load %arg3[%c6_69, %c0_70] : memref<9x256xf32, #tpu.memory_space<vmem>>, vector<1x256xf32>
    %102 = vector.broadcast %101 : vector<1x256xf32> to vector<4x256xf32>
    %103 = arith.mulf %100, %102 : vector<4x256xf32>
    %c24_71 = arith.constant 24 : index
    %c0_72 = arith.constant 0 : index
    %104 = vector.load %arg6[%c24_71, %c0_72] : memref<36x256xf32, #tpu.memory_space<vmem>>, vector<4x256xf32>
    tpu.vector_store %arg6[%c24_71, %c0_72], %103 {strides = array<i32>} : memref<36x256xf32, #tpu.memory_space<vmem>>, vector<4x256xf32>,
    %c7_73 = arith.constant 7 : index
    %c0_74 = arith.constant 0 : index
    %105 = vector.load %arg3[%c7_73, %c0_74] : memref<9x256xf32, #tpu.memory_space<vmem>>, vector<1x256xf32>
    %106 = vector.broadcast %105 : vector<1x256xf32> to vector<4x256xf32>
    %107 = arith.mulf %74, %106 : vector<4x256xf32>
    %c28_75 = arith.constant 28 : index
    %c0_76 = arith.constant 0 : index
    %108 = vector.load %arg6[%c28_75, %c0_76] : memref<36x256xf32, #tpu.memory_space<vmem>>, vector<4x256xf32>
    tpu.vector_store %arg6[%c28_75, %c0_76], %107 {strides = array<i32>} : memref<36x256xf32, #tpu.memory_space<vmem>>, vector<4x256xf32>,
    %c255_i32_77 = arith.constant 255 : i32
    %109 = tpu.dynamic_rotate %74 by %c255_i32_77 dim 1 : vector<4x256xf32>, i32 -> vector<4x256xf32>
    %c8_78 = arith.constant 8 : index
    %c0_79 = arith.constant 0 : index
    %110 = vector.load %arg3[%c8_78, %c0_79] : memref<9x256xf32, #tpu.memory_space<vmem>>, vector<1x256xf32>
    %111 = vector.broadcast %110 : vector<1x256xf32> to vector<4x256xf32>
    %112 = arith.mulf %109, %111 : vector<4x256xf32>
    %c32_80 = arith.constant 32 : index
    %c0_81 = arith.constant 0 : index
    %113 = vector.load %arg6[%c32_80, %c0_81] : memref<36x256xf32, #tpu.memory_space<vmem>>, vector<4x256xf32>
    tpu.vector_store %arg6[%c32_80, %c0_81], %112 {strides = array<i32>} : memref<36x256xf32, #tpu.memory_space<vmem>>, vector<4x256xf32>,
    %c0_82 = arith.constant 0 : index
    %c0_83 = arith.constant 0 : index
    %114 = vector.load %arg6[%c0_82, %c0_83] : memref<36x256xf32, #tpu.memory_space<vmem>>, vector<36x256xf32>
    %cst_84 = arith.constant dense<0.000000e+00> : vector<4x256xf32>
    %115 = tpu.matmul %4, %114, %cst_84 {dimension_numbers = #tpu.dot_dimension_numbers<[1], [0], [0], [1], [0, 0, 1, 1], [], []>} : vector<4x36xf32>, vector<36x256xf32>, vector<4x256xf32> -> vector<4x256xf32>
    %116 = vector.extract_strided_slice %2 {offsets = [0, 2], sizes = [4, 1], strides = [1, 1]} : vector<4x4xf32> to vector<4x1xf32>
    %117 = vector.extract_strided_slice %2 {offsets = [0, 3], sizes = [4, 1], strides = [1, 1]} : vector<4x4xf32> to vector<4x1xf32>
    %cst_85 = arith.constant dense<0.000000e+00> : vector<4xf32>
    %118 = vector.multi_reduction <add>, %115, %cst_85 [1] : vector<4x256xf32> to vector<4xf32>
    %119 = vector.shape_cast %118 : vector<4xf32> to vector<4x1xf32>
    %cst_86 = arith.constant 3.906250e-03 : f32
    %120 = vector.broadcast %cst_86 : f32 to vector<4x1xf32>
    %121 = arith.mulf %119, %120 : vector<4x1xf32>
    %122 = arith.mulf %115, %115 : vector<4x256xf32>
    %cst_87 = arith.constant dense<0.000000e+00> : vector<4xf32>
    %123 = vector.multi_reduction <add>, %122, %cst_87 [1] : vector<4x256xf32> to vector<4xf32>
    %124 = vector.shape_cast %123 : vector<4xf32> to vector<4x1xf32>
    %cst_88 = arith.constant 3.906250e-03 : f32
    %125 = vector.broadcast %cst_88 : f32 to vector<4x1xf32>
    %126 = arith.mulf %124, %125 : vector<4x1xf32>
    %127 = arith.mulf %121, %121 : vector<4x1xf32>
    %128 = arith.subf %126, %127 : vector<4x1xf32>
    %cst_89 = arith.constant 9.99999974E-6 : f32
    %129 = vector.broadcast %cst_89 : f32 to vector<4x1xf32>
    %130 = arith.addf %128, %129 : vector<4x1xf32>
    %131 = math.rsqrt %130 : vector<4x1xf32>
    %132 = arith.mulf %131, %116 : vector<4x1xf32>
    %133 = vector.broadcast %132 : vector<4x1xf32> to vector<4x256xf32>
    %134 = arith.mulf %115, %133 : vector<4x256xf32>
    %135 = arith.mulf %121, %132 : vector<4x1xf32>
    %136 = arith.subf %117, %135 : vector<4x1xf32>
    %137 = vector.broadcast %136 : vector<4x1xf32> to vector<4x256xf32>
    %138 = arith.addf %134, %137 : vector<4x256xf32>
    %139 = arith.addf %138, %1 : vector<4x256xf32>
    %cst_90 = arith.constant 0.000000e+00 : f32
    %140 = vector.broadcast %cst_90 : f32 to vector<4x256xf32>
    %141 = arith.maximumf %139, %140 : vector<4x256xf32>
    %c0_91 = arith.constant 0 : index
    %c0_92 = arith.constant 0 : index
    %c0_93 = arith.constant 0 : index
    %142 = vector.load %arg5[%c0_91, %c0_92, %c0_93] : memref<1x4x256xf32, #tpu.memory_space<vmem>>, vector<1x4x256xf32>
    %143 = vector.shape_cast %142 : vector<1x4x256xf32> to vector<4x256xf32>
    %144 = vector.shape_cast %141 : vector<4x256xf32> to vector<1x4x256xf32>
    tpu.vector_store %arg5[%c0_91, %c0_92, %c0_93], %144 {strides = array<i32>} : memref<1x4x256xf32, #tpu.memory_space<vmem>>, vector<1x4x256xf32>,
    return
  }
  func.func @transform_0(%arg0: i32) -> (i32, i32, i32) {
    %c0_i32 = arith.constant 0 : i32
    %c0_i32_0 = arith.constant 0 : i32
    %c0_i32_1 = arith.constant 0 : i32
    return %arg0, %c0_i32, %c0_i32_0 : i32, i32, i32
  }
  func.func @transform_1(%arg0: i32) -> (i32, i32) {
    %c0_i32 = arith.constant 0 : i32
    %c0_i32_0 = arith.constant 0 : i32
    %c0_i32_1 = arith.constant 0 : i32
    return %c0_i32, %c0_i32_0 : i32, i32
  }
  func.func @transform_2(%arg0: i32) -> (i32, i32) {
    %c0_i32 = arith.constant 0 : i32
    %c0_i32_0 = arith.constant 0 : i32
    %c0_i32_1 = arith.constant 0 : i32
    return %c0_i32, %c0_i32_0 : i32, i32
  }
  func.func @transform_3(%arg0: i32) -> (i32, i32) {
    %c0_i32 = arith.constant 0 : i32
    %c0_i32_0 = arith.constant 0 : i32
    %c0_i32_1 = arith.constant 0 : i32
    return %c0_i32, %c0_i32_0 : i32, i32
  }
  func.func @transform_4(%arg0: i32) -> (i32, i32, i32) {
    %c0_i32 = arith.constant 0 : i32
    %c0_i32_0 = arith.constant 0 : i32
    %c0_i32_1 = arith.constant 0 : i32
    return %arg0, %c0_i32, %c0_i32_0 : i32, i32, i32
  }
}

</mosaic_0001>

<bundles_post_ra>
// kernel: residual_block.1
= control target key start
LH: loop header
LB: loop body
LE: loop exit
PB: predicated region body
PF: predicated region fallthrough
CT: control target
= control target key end

     0   :  { %s1049_s15 = smov 0   ;;  %s1308_s0 = inlined_call_operand.vmem [shape: f32[2,4,256], index: 0, kind: input, shape index: {}]   ;;  %s1309_s1 = inlined_call_operand.vmem [shape: f32[8,36], index: 1, kind: input, shape index: {}]   ;;  %s1310_s2 = inlined_call_operand.vmem [shape: f32[9,256], index: 2, kind: input, shape index: {}]   ;;  %s1311_s3 = inlined_call_operand.vmem [shape: f32[4,4], index: 3, kind: input, shape index: {}]   ;;  %s1312_s4 = inlined_call_operand.vmem [shape: f32[2,4,256], index: 4, kind: output, shape index: {}]  }
   0x1 LB: > { %s948_s16 = sadd.s32 4294967295, %s1013_s15   ;;  %p952_p0 = scmp.ge.s32.totalorder %s1013_s15, 1  ;;  %s1013_s15 = sphi %s1049_s15, %s14_s15  }
   0x2   : > { %p162_p1 = scmp.lt.s32.totalorder %s1013_s15, 3 }
   0x4   : > { %p163_p2 = pnand %p952_p0, %p162_p1 }
   0x5   : > { %p188_p3 = scmp.lt.s32.totalorder (!%p163_p2), %s948_s16, 1  ;;  %s1015_s21 = smov (!%p163_p2), 112  }
   0x6   : > { %166 = sbr.rel (%p163_p2) target bundleno = 1754 (0x6da), region = 36  ;;  %s1016_s22 = smov (!%p163_p2), 16  }
   0x7   : > { %s1017_s23 = smov (!%p163_p2), 127   ;;  %s1018_s24 = smov (!%p163_p2), 1  }
   0xb   : > { %s1314_s16 = smov (!%p188_p3, %s948_s16), 1  ;;  %v209_v2 = vlaneseq  ;;  %v962_v7 = vld [vmem:[%s1310_s2 + $0x7] ss:$8 sm:$0x3]  ;;  %v1019_v51 = vmov 0.0   ;;  %vm434_vm4 = vcmask 1043456  }
   0xc   : > { %s979_s17 = sshll.u32 %s1314_s16, 3  ;;  %v957_v8 = vld [vmem:[%s1310_s2 + $0x1] ss:$8 sm:$0x3]  ;;  %505 = vmatprep.mubr.f32.mxu0 %v1019_v51  ;;  %838 = vmatprep.mubr.f32.mxu1 %v1019_v51  ;;  %vm430_vm5 = vcmask 293888  }
   0xd   : > { %s192_s20 = scalar_lea.vmem %s1308_s0, %s979_s17  ;;  %v231_v3 = vshrl.u32 %v209_v2, 7  ;;  %v1089_v4 = vand.u32 127, %v209_v2  ;;  %v960_v11 = vld [vmem:[%s1310_s2 + $0x5] ss:$8 sm:$0x3] }
   0xe   : > { %v1065_v0 = vld [vmem:[%s192_s20] sm:$0xff]  ;;  %v963_v52 = vld [vmem:[%s1310_s2 + $0x10] ss:$8 sm:$0x3] }
   0xf   : > { %214 = vrot.lane.b32.xlu0 %v1065_v0, %s1015_s21  ;;  %320 = vst [vmem:[#allocation2 + $0x48] sm:$0xf] %v1065_v0  ;;  %205 = vrot.lane.b32.xlu1 %v1065_v0, %s1016_s22  ;;  %v1074_v1 = vcombine.high %v1065_v0, %v1065_v0  ;;  %v1091_v5 = vsub.s32 0, %v231_v3  ;;  %v1093_v6 = vsub.s32 1, %v231_v3  ;;  %vm218_vm0 = vcmp.lt.s32.totalorder %v1089_v4, 112 }
  0x10   : > { %vm211_vm1 = vcmp.lt.s32.totalorder %v1089_v4, 16  ;;  %vm271_vm2 = vcmp.lt.s32.totalorder %v1089_v4, 127  ;;  %v959_v27 = vld [vmem:[%s1310_s2 + $0x3] ss:$8 sm:$0x3]  ;;  %vm225_vm3 = vcmp.lt.s32.totalorder %v1089_v4, 1 }
  0x11   : > { %321 = vst [vmem:[#allocation2 + $0x28] sm:$0xf] %v1074_v1  ;;  %v384_v12 = vrot.slane %v962_v7, %v1093_v6  ;;  %v380_v13 = vrot.slane %v962_v7, %v1091_v5  ;;  %v254_v14 = vrot.slane %v957_v8, %v1093_v6  ;;  %v250_v15 = vrot.slane %v957_v8, %v1091_v5  ;;  %v961_v55 = vld [vmem:[%s1310_s2 + $0x6] ss:$8 sm:$0x3] }
  0x12   : > { %v334_v18 = vrot.slane %v960_v11, %v1091_v5  ;;  %v338_v19 = vrot.slane %v960_v11, %v1093_v6  ;;  %v303_v37 = vrot.slane %v959_v27, %v1091_v5  ;;  %v307_v40 = vrot.slane %v959_v27, %v1093_v6  ;;  %v958_v2 = vld [vmem:[%s1310_s2 + $0x2] ss:$8 sm:$0x3] }
  0x13   : > { %216 = vrot.lane.b32.xlu0 %v1074_v1, %s1015_s21  ;;  %207 = vrot.lane.b32.xlu1 %v1074_v1, %s1016_s22  ;;  %v409_v53 = vrot.slane %v963_v52, %v1091_v5  ;;  %v413_v54 = vrot.slane %v963_v52, %v1093_v6  ;;  %v363_v62 = vrot.slane %v961_v55, %v1091_v5 }
  0x14   : > { %v367_v63 = vrot.slane %v961_v55, %v1093_v6 }
  0x17   : > { %324 = vrot.lane.b32.xlu1 %v1074_v1, %s1017_s23  ;;  %322 = vrot.lane.b32.xlu0 %v1065_v0, %s1017_s23 }
  0x1b   : > { %293 = vrot.lane.b32.xlu1 %v1074_v1, %s1018_s24  ;;  %291 = vrot.lane.b32.xlu0 %v1065_v0, %s1018_s24 }
  0x81   : > { %v215_v9 = vpop.permute.xlu0 %214  ;;  %v206_v10 = vpop.permute.xlu1 %205 }
  0x85   : > { %v217_v16 = vpop.permute.xlu0 %216  ;;  %v208_v17 = vpop.permute.xlu1 %207 }
  0x86   : > { %v220_v20 = vsel %vm218_vm0, %v217_v16, %v215_v9  ;;  %v219_v21 = vsel %vm218_vm0, %v215_v9, %v217_v16  ;;  %v212_v22 = vsel %vm211_vm1, %v206_v10, %v208_v17  ;;  %v213_v23 = vsel %vm211_vm1, %v208_v17, %v206_v10 }
  0x87   : > { %399 = vrot.lane.b32.xlu1 %v220_v20, %s1017_s23  ;;  %v388_v24 = vmul.f32 %v384_v12, %v220_v20  ;;  %397 = vrot.lane.b32.xlu0 %v219_v21, %s1017_s23  ;;  %v387_v25 = vmul.f32 %v380_v13, %v219_v21  ;;  %v258_v26 = vmul.f32 %v254_v14, %v212_v22  ;;  %v228_v14 = vld [vmem:[%s1310_s2] ss:$8 sm:$0x3] }
  0x88   : > { %v257_v28 = vmul.f32 %v250_v15, %v213_v23  ;;  %v280_v12 = vrot.slane %v958_v2, %v1091_v5  ;;  %v284_v13 = vrot.slane %v958_v2, %v1093_v6 }
  0x89   : > { %v392_v29 = vrot.slane %v388_v24, 4  ;;  %v391_v30 = vrot.slane %v387_v25, 4  ;;  %v262_v31 = vrot.slane %v258_v26, 4  ;;  %v325_v32 = vpop.permute.xlu1 %324  ;;  %v323_v33 = vpop.permute.xlu0 %322 }
  0x8a   : > { %v261_v34 = vrot.slane %v257_v28, 4  ;;  %v326_v35 = vsel %vm271_vm2, %v323_v33, %v325_v32  ;;  %v327_v36 = vsel %vm271_vm2, %v325_v32, %v323_v33 }
  0x8b   : > { %396 = vst [vmem:[#allocation2 + $0x20] sm:$0xf0] %v392_v29  ;;  %395 = vst [vmem:[#allocation2 + $0x8] sm:$0xf0] %v391_v30  ;;  %353 = vrot.lane.b32.xlu1 %v220_v20, %s1018_s24  ;;  %351 = vrot.lane.b32.xlu0 %v219_v21, %s1018_s24  ;;  %v341_v38 = vmul.f32 %v334_v18, %v326_v35  ;;  %v342_v39 = vmul.f32 %v338_v19, %v327_v36 }
  0x8c   : > { %266 = vst [vmem:[#allocation2] sm:$0xf0] %v262_v31  ;;  %265 = vst [vmem:[#allocation2 + $0x30] sm:$0xf0] %v261_v34  ;;  %v233_v21 = vrot.slane %v228_v14, %v1091_v5 }
  0x8d   : > { %v345_v41 = vrot.slane %v341_v38, 4  ;;  %v346_v42 = vrot.slane %v342_v39, 4  ;;  %v294_v43 = vpop.permute.xlu1 %293  ;;  %v292_v44 = vpop.permute.xlu0 %291  ;;  %v200_v39 = vld [vmem:[%s1309_s1] sm:$0xf] }
  0x8e   : > { %v295_v45 = vsel %vm225_vm3, %v292_v44, %v294_v43  ;;  %v296_v46 = vsel %vm225_vm3, %v294_v43, %v292_v44 }
  0x8f   : > { %269 = vrot.lane.b32.xlu1 %v212_v22, %s1017_s23  ;;  %267 = vrot.lane.b32.xlu0 %v213_v23, %s1017_s23  ;;  %349 = vst [vmem:[#allocation2 + $0x48] sm:$0xf0] %v345_v41  ;;  %350 = vst [vmem:[#allocation2 + $0x28] sm:$0xf0] %v346_v42  ;;  %v310_v47 = vmul.f32 %v303_v37, %v296_v46  ;;  %v311_v48 = vmul.f32 %v307_v40, %v295_v45 }
  0x91   : > { %v314_v49 = vrot.slane %v310_v47, 4  ;;  %v315_v50 = vrot.slane %v311_v48, 4 }
  0x93   : > { %223 = vrot.lane.b32.xlu1 %v212_v22, %s1018_s24  ;;  %221 = vrot.lane.b32.xlu0 %v213_v23, %s1018_s24  ;;  %318 = vst [vmem:[#allocation2 + $0x18] sm:$0xf0] %v314_v49  ;;  %319 = vst [vmem:[#allocation2 + $0x10] sm:$0xf0] %v315_v50  ;;  %v237_v22 = vrot.slane %v228_v14, %v1093_v6  ;;  %v1020_v50 = vmov 0  }
  0x94   : > { %998 = vset.pattern.permute.xlu1 %v1020_v50  ;;  %v972_v14 = vld [vmem:[%s1310_s2 + $0x7] ss:$8 sm:$0x3] }
  0x96   : > { %v425_v33 = vld [vmem:[#allocation2 + $0x28] sm:$0xff] }
  0x97   : > { %v424_v34 = vld [vmem:[#allocation2 + $0x48] sm:$0xff] }
  0xf9   : > { %v400_v56 = vpop.permute.xlu1 %399  ;;  %v398_v57 = vpop.permute.xlu0 %397 }
  0xfa   : > { %v401_v58 = vsel %vm271_vm2, %v398_v57, %v400_v56  ;;  %v402_v59 = vsel %vm271_vm2, %v400_v56, %v398_v57 }
  0xfb   : > { %v416_v60 = vmul.f32 %v409_v53, %v401_v58  ;;  %v417_v61 = vmul.f32 %v413_v54, %v402_v59  ;;  %v1021_v58 = vmov 1   ;;  %v1192_v59 = vld [vmem:[%s1311_s3] sm:$0xf] }
  0xfc   : > { %999 = vset.pattern.permute.xlu0 %v1021_v58  ;;  %v973_v58 = vld [vmem:[%s1310_s2 + $0x10] ss:$8 sm:$0x3] }
  0xfd   : > { %418 = vst [vmem:[#allocation2 + $0x40] sm:$0xf] %v416_v60  ;;  %419 = vst [vmem:[#allocation2 + $0x38] sm:$0xf] %v417_v61  ;;  %v354_v3 = vpop.permute.xlu1 %353  ;;  %v352_v7 = vpop.permute.xlu0 %351 }
  0xfe   : > { %v355_v8 = vsel %vm225_vm3, %v352_v7, %v354_v3  ;;  %v356_v9 = vsel %vm225_vm3, %v354_v3, %v352_v7 }
  0xff   : > { %v370_v10 = vmul.f32 %v363_v62, %v356_v9  ;;  %v371_v11 = vmul.f32 %v367_v63, %v355_v8 }
 0x101   : > { %372 = vst [vmem:[#allocation2 + $0x8] sm:$0xf] %v370_v10  ;;  %373 = vst [vmem:[#allocation2 + $0x20] sm:$0xf] %v371_v11  ;;  %v270_v15 = vpop.permute.xlu1 %269  ;;  %v268_v16 = vpop.permute.xlu0 %267 }
 0x102   : > { %v272_v17 = vsel %vm271_vm2, %v268_v16, %v270_v15  ;;  %v273_v18 = vsel %vm271_vm2, %v270_v15, %v268_v16  ;;  %v720_v16 = vrot.slane %v972_v14, %v1093_v6 }
 0x103   : > { %v287_v19 = vmul.f32 %v280_v12, %v272_v17  ;;  %v288_v20 = vmul.f32 %v284_v13, %v273_v18  ;;  %v716_v17 = vrot.slane %v972_v14, %v1091_v5  ;;  %v967_v18 = vld [vmem:[%s1310_s2 + $0x1] ss:$8 sm:$0x3] }
 0x104   : > { %v429_v23 = vld [vmem:[#allocation2 + $0x38] sm:$0xf]  ;;  %v428_v24 = vld [vmem:[#allocation2 + $0x40] sm:$0xf] }
 0x105   : > { %289 = vst [vmem:[#allocation2 + $0x18] sm:$0xf] %v287_v19  ;;  %290 = vst [vmem:[#allocation2 + $0x10] sm:$0xf] %v288_v20  ;;  %v224_v25 = vpop.permute.xlu1 %223  ;;  %964 = vmatprep.subr.msk.mxu0 %vm434_vm4, %v429_v23  ;;  %v222_v26 = vpop.permute.xlu0 %221  ;;  %v592_v23 = vrot.slane %v967_v18, %v1091_v5 }
 0x106   : > { %v226_v27 = vsel %vm225_vm3, %v222_v26, %v224_v25  ;;  %v227_v28 = vsel %vm225_vm3, %v224_v25, %v222_v26  ;;  %965 = vmatpush1.msk.msra.mxu0 %vm434_vm4, %v428_v24  ;;  %v970_v26 = vld [vmem:[%s1310_s2 + $0x5] ss:$8 sm:$0x3] }
 0x107   : > { %v240_v29 = vmul.f32 %v233_v21, %v227_v28  ;;  %v241_v30 = vmul.f32 %v237_v22, %v226_v27  ;;  %v596_v27 = vrot.slane %v967_v18, %v1093_v6 }
 0x108   : > { %v427_v31 = vld [vmem:[#allocation2 + $0x20] sm:$0xff]  ;;  %v426_v32 = vld [vmem:[#allocation2 + $0x8] sm:$0xff] }
 0x109   : > { %242 = vst [vmem:[#allocation2 + $0x30] sm:$0xf] %v240_v29  ;;  %243 = vst [vmem:[#allocation2] sm:$0xf] %v241_v30  ;;  %465 = vmatprep.subr.mxu0 %v427_v31  ;;  %v672_v31 = vrot.slane %v970_v26, %v1091_v5 }
 0x10a   : > { %466 = vmatpush1.msra.mxu0 %v426_v32 }
 0x10b   : > { %467 = vmatprep.subr.mxu0 %v425_v33 }
 0x10c   : > { %468 = vmatpush1.msra.mxu0 %v424_v34  ;;  %v423_v35 = vld [vmem:[#allocation2 + $0x10] sm:$0xff]  ;;  %v422_v36 = vld [vmem:[#allocation2 + $0x18] sm:$0xff] }
 0x10d   : > { %469 = vmatprep.subr.mxu0 %v423_v35  ;;  %v676_v35 = vrot.slane %v970_v26, %v1093_v6 }
 0x10e   : > { %470 = vmatpush1.msra.mxu0 %v422_v36 }
 0x110   : > { %v421_v37 = vld [vmem:[#allocation2] sm:$0xff]  ;;  %v420_v38 = vld [vmem:[#allocation2 + $0x30] sm:$0xff] }
 0x111   : > { %471 = vmatprep.subr.mxu0 %v421_v37 }
 0x112   : > { %472 = vmatpush1.msra.mxu0 %v420_v38  ;;  %v969_v38 = vld [vmem:[%s1310_s2 + $0x3] ss:$8 sm:$0x3] }
 0x113   : > { %966 = vmatmul.mubr.msk.f32.vlgmr.msra.gmra.mxu0 %vm430_vm5, %v200_v39 }
 0x1d3   : > { %v507_v40 = vpop.f32.mrf.mxu0 }
 0x1d4   : > { %v518_v41 = vmul.f32 %v507_v40, %v507_v40  ;;  %v512_v45 = vsel %vm434_vm4, %v507_v40, 0.0 }
 0x1d5   : > { %v509_v42 = vpop.f32.mrf.mxu0 }
 0x1d6   : > { %v513_v43 = vsel %vm434_vm4, %v509_v42, 0.0  ;;  %v519_v44 = vmul.f32 %v509_v42, %v509_v42  ;;  %v520_v47 = vsel %vm434_vm4, %v518_v41, 0.0 }
 0x1d7   : > { %v514_v46 = vadd.f32 %v513_v43, %v512_v45 }
 0x1d8   : > { %v521_v48 = vsel %vm434_vm4, %v519_v44, 0.0  ;;  %v642_v44 = vrot.slane %v969_v38, %v1091_v5 }
 0x1d9   : > { %515 = vadd.xlane.f32.xlu0 %v514_v46  ;;  %v522_v49 = vadd.f32 %v521_v48, %v520_v47  ;;  %v646_v47 = vrot.slane %v969_v38, %v1093_v6 }
 0x1db   : > { %523 = vadd.xlane.f32.xlu1 %v522_v49 }
 0x262   : > { %v516_v51 = vpop.xlane.xlu0 %515 }
 0x263   : > { %v517_v52 = vmul.f32 0.00390625, %v516_v51 }
 0x264   : > { %v524_v53 = vpop.xlane.xlu1 %523 }
 0x265   : > { %v526_v54 = vmul.f32 %v517_v52, %v517_v52  ;;  %v525_v55 = vmul.f32 0.00390625, %v524_v53 }
 0x267   : > { %v527_v56 = vsub.f32 %v525_v55, %v526_v54 }
 0x269   : > { %v528_v57 = vadd.f32 1e-05, %v527_v56 }
 0x26b   : > { %1003 = vrsqrt.f32 %v528_v57 }
 0x278   : > { %v1004_v60 = vpop.eup %1003 }
 0x279   : > { %v530_v61 = vmul.f32 %v1004_v60, %v1192_v59  ;;  %v744_v60 = vrot.slane %v973_v58, %v1091_v5 }
 0x27b   : > { %533 = vperm.xlu1 %998, %v530_v61   ;;  %v538_v62 = vmul.f32 %v530_v61, %v517_v52  ;;  %v748_v61 = vrot.slane %v973_v58, %v1093_v6 }
 0x27d   : > { %540 = vrot.lane.b32.xlu0 %v538_v62, %s1018_s24  ;;  %v971_v62 = vld [vmem:[%s1310_s2 + $0x6] ss:$8 sm:$0x3] }
 0x2ef   : > { %v541_v63 = vpop.permute.xlu0 %540 }
 0x2f0   : > { %v543_v2 = vsub.f32 %v1192_v59, %v541_v63 }
 0x2f2   : > { %546 = vperm.xlu0 %999, %v543_v2  }
 0x2f6   : > { %v534_v3 = vpop.permute.xlu1 %533 }
 0x2f7   : > { %v536_v7 = vmul.f32 %v534_v3, %v507_v40  ;;  %v537_v8 = vmul.f32 %v534_v3, %v509_v42 }
 0x36d   : > { %v547_v9 = vpop.permute.xlu0 %546 }
 0x36e   : > { %v549_v10 = vadd.f32 %v547_v9, %v536_v7  ;;  %v550_v11 = vadd.f32 %v547_v9, %v537_v8 }
 0x370   : > { %v551_v12 = vmax.f32 %v549_v10, 0.0  ;;  %v552_v13 = vmax.f32 %v550_v11, 0.0  ;;  %v700_v10 = vrot.slane %v971_v62, %v1091_v5  ;;  %v704_v11 = vrot.slane %v971_v62, %v1093_v6 }
 0x372   : > { %659 = vst [vmem:[#allocation2 + $0x48] sm:$0xf] %v551_v12  ;;  %660 = vst [vmem:[#allocation2 + $0x28] sm:$0xf] %v552_v13  ;;  %553 = vrot.lane.b32.xlu0 %v551_v12, %s1016_s22  ;;  %559 = vrot.lane.b32.xlu1 %v551_v12, %s1015_s21 }
 0x376   : > { %661 = vrot.lane.b32.xlu0 %v551_v12, %s1017_s23  ;;  %561 = vrot.lane.b32.xlu1 %v552_v13, %s1015_s21 }
 0x37a   : > { %631 = vrot.lane.b32.xlu0 %v551_v12, %s1018_s24  ;;  %555 = vrot.lane.b32.xlu1 %v552_v13, %s1016_s22  ;;  %v968_v12 = vld [vmem:[%s1310_s2 + $0x2] ss:$8 sm:$0x3] }
 0x37e   : > { %663 = vrot.lane.b32.xlu1 %v552_v13, %s1017_s23 }
 0x382   : > { %633 = vrot.lane.b32.xlu1 %v552_v13, %s1018_s24 }
 0x3e4   : > { %v560_v15 = vpop.permute.xlu1 %559  ;;  %v554_v19 = vpop.permute.xlu0 %553 }
 0x3e8   : > { %v562_v20 = vpop.permute.xlu1 %561  ;;  %v662_v34 = vpop.permute.xlu0 %661 }
 0x3e9   : > { %v564_v21 = vsel %vm218_vm0, %v562_v20, %v560_v15  ;;  %v563_v22 = vsel %vm218_vm0, %v560_v15, %v562_v20  ;;  %v624_v20 = vrot.slane %v968_v12, %v1093_v6 }
 0x3ea   : > { %735 = vrot.lane.b32.xlu1 %v564_v21, %s1017_s23  ;;  %v724_v24 = vmul.f32 %v720_v16, %v564_v21  ;;  %733 = vrot.lane.b32.xlu0 %v563_v22, %s1017_s23  ;;  %v723_v25 = vmul.f32 %v716_v17, %v563_v22 }
 0x3ec   : > { %v728_v28 = vrot.slane %v724_v24, 4  ;;  %v727_v29 = vrot.slane %v723_v25, 4  ;;  %v556_v30 = vpop.permute.xlu1 %555  ;;  %v632_v48 = vpop.permute.xlu0 %631 }
 0x3ed   : > { %v558_v32 = vsel %vm211_vm1, %v556_v30, %v554_v19  ;;  %v557_v33 = vsel %vm211_vm1, %v554_v19, %v556_v30  ;;  %v620_v19 = vrot.slane %v968_v12, %v1091_v5 }
 0x3ee   : > { %732 = vst [vmem:[#allocation2 + $0x20] sm:$0xf0] %v728_v28  ;;  %731 = vst [vmem:[#allocation2 + $0x8] sm:$0xf0] %v727_v29  ;;  %691 = vrot.lane.b32.xlu1 %v564_v21, %s1018_s24  ;;  %689 = vrot.lane.b32.xlu0 %v563_v22, %s1018_s24  ;;  %v599_v36 = vmul.f32 %v592_v23, %v558_v32  ;;  %v600_v37 = vmul.f32 %v596_v27, %v557_v33 }
 0x3ef   : > { %v571_v21 = vld [vmem:[%s1310_s2] ss:$8 sm:$0x3] }
 0x3f0   : > { %v664_v39 = vpop.permute.xlu1 %663  ;;  %v603_v40 = vrot.slane %v599_v36, 4  ;;  %v604_v41 = vrot.slane %v600_v37, 4  ;;  %v576_v28 = vrot.slane %v571_v21, %v1091_v5  ;;  %v580_v29 = vrot.slane %v571_v21, %v1093_v6 }
 0x3f1   : > { %v665_v42 = vsel %vm271_vm2, %v662_v34, %v664_v39  ;;  %v666_v43 = vsel %vm271_vm2, %v664_v39, %v662_v34 }
 0x3f2   : > { %v679_v45 = vmul.f32 %v672_v31, %v665_v42  ;;  %v680_v46 = vmul.f32 %v676_v35, %v666_v43  ;;  %609 = vrot.lane.b32.xlu0 %v558_v32, %s1017_s23  ;;  %607 = vst [vmem:[#allocation2 + $0x30] sm:$0xf0] %v603_v40  ;;  %611 = vrot.lane.b32.xlu1 %v557_v33, %s1017_s23  ;;  %608 = vst [vmem:[#allocation2] sm:$0xf0] %v604_v41  ;;  %v201_v43 = vld [vmem:[%s1309_s1 + $0x4] sm:$0xf] }
 0x3f4   : > { %v683_v49 = vrot.slane %v679_v45, 4  ;;  %v684_v50 = vrot.slane %v680_v46, 4  ;;  %v634_v51 = vpop.permute.xlu1 %633 }
 0x3f5   : > { %v635_v52 = vsel %vm225_vm3, %v632_v48, %v634_v51  ;;  %v636_v53 = vsel %vm225_vm3, %v634_v51, %v632_v48 }
 0x3f6   : > { %687 = vst [vmem:[#allocation2 + $0x48] sm:$0xf0] %v683_v49  ;;  %688 = vst [vmem:[#allocation2 + $0x28] sm:$0xf0] %v684_v50  ;;  %v649_v54 = vmul.f32 %v642_v44, %v636_v53  ;;  %v650_v55 = vmul.f32 %v646_v47, %v635_v52  ;;  %565 = vrot.lane.b32.xlu0 %v558_v32, %s1018_s24  ;;  %567 = vrot.lane.b32.xlu1 %v557_v33, %s1018_s24 }
 0x3f8   : > { %v653_v56 = vrot.slane %v649_v54, 4  ;;  %v654_v57 = vrot.slane %v650_v55, 4  ;;  %v1022_v54 = vmov 2  }
 0x3f9   : > { %1000 = vset.pattern.permute.xlu1 %v1022_v54 }
 0x3fa   : > { %657 = vst [vmem:[#allocation2 + $0x18] sm:$0xf0] %v653_v56  ;;  %658 = vst [vmem:[#allocation2 + $0x10] sm:$0xf0] %v654_v57 }
 0x3fd   : > { %v760_v38 = vld [vmem:[#allocation2 + $0x28] sm:$0xff] }
 0x3fe   : > { %v759_v39 = vld [vmem:[#allocation2 + $0x48] sm:$0xff] }
 0x45c   : > { %v734_v63 = vpop.permute.xlu0 %733  ;;  %v736_v2 = vpop.permute.xlu1 %735 }
 0x45d   : > { %v737_v3 = vsel %vm271_vm2, %v734_v63, %v736_v2  ;;  %v738_v7 = vsel %vm271_vm2, %v736_v2, %v734_v63  ;;  %v1023_v63 = vmov 3  }
 0x45e   : > { %v751_v8 = vmul.f32 %v744_v60, %v737_v3  ;;  %v752_v9 = vmul.f32 %v748_v61, %v738_v7  ;;  %1001 = vset.pattern.permute.xlu0 %v1023_v63 }
 0x460   : > { %753 = vst [vmem:[#allocation2 + $0x40] sm:$0xf] %v751_v8  ;;  %754 = vst [vmem:[#allocation2 + $0x38] sm:$0xf] %v752_v9  ;;  %v690_v13 = vpop.permute.xlu0 %689  ;;  %v692_v14 = vpop.permute.xlu1 %691 }
 0x461   : > { %v693_v15 = vsel %vm225_vm3, %v690_v13, %v692_v14  ;;  %v694_v16 = vsel %vm225_vm3, %v692_v14, %v690_v13 }
 0x462   : > { %v707_v17 = vmul.f32 %v700_v10, %v694_v16  ;;  %v708_v18 = vmul.f32 %v704_v11, %v693_v15 }
 0x464   : > { %709 = vst [vmem:[#allocation2 + $0x8] sm:$0xf] %v707_v17  ;;  %710 = vst [vmem:[#allocation2 + $0x20] sm:$0xf] %v708_v18  ;;  %v610_v22 = vpop.permute.xlu0 %609  ;;  %v612_v23 = vpop.permute.xlu1 %611 }
 0x465   : > { %v613_v24 = vsel %vm271_vm2, %v610_v22, %v612_v23  ;;  %v614_v25 = vsel %vm271_vm2, %v612_v23, %v610_v22 }
 0x466   : > { %v627_v26 = vmul.f32 %v620_v19, %v613_v24  ;;  %v628_v27 = vmul.f32 %v624_v20, %v614_v25 }
 0x467   : > { %v764_v30 = vld [vmem:[#allocation2 + $0x38] sm:$0xf]  ;;  %v763_v31 = vld [vmem:[#allocation2 + $0x40] sm:$0xf] }
 0x468   : > { %629 = vst [vmem:[#allocation2 + $0x18] sm:$0xf] %v627_v26  ;;  %630 = vst [vmem:[#allocation2 + $0x10] sm:$0xf] %v628_v27  ;;  %v566_v32 = vpop.permute.xlu0 %565  ;;  %974 = vmatprep.subr.msk.mxu1 %vm434_vm4, %v764_v30  ;;  %v568_v33 = vpop.permute.xlu1 %567 }
 0x469   : > { %v569_v34 = vsel %vm225_vm3, %v566_v32, %v568_v33  ;;  %v570_v35 = vsel %vm225_vm3, %v568_v33, %v566_v32  ;;  %975 = vmatpush1.msk.msra.mxu1 %vm434_vm4, %v763_v31 }
 0x46a   : > { %v583_v36 = vmul.f32 %v576_v28, %v570_v35  ;;  %v584_v5 = vmul.f32 %v580_v29, %v569_v34 }
 0x46b   : > { %v762_v37 = vld [vmem:[#allocation2 + $0x20] sm:$0xff]  ;;  %v761_v6 = vld [vmem:[#allocation2 + $0x8] sm:$0xff] }
 0x46c   : > { %585 = vst [vmem:[#allocation2 + $0x30] sm:$0xf] %v583_v36  ;;  %586 = vst [vmem:[#allocation2] sm:$0xf] %v584_v5  ;;  %798 = vmatprep.subr.mxu1 %v762_v37 }
 0x46d   : > { %799 = vmatpush1.msra.mxu1 %v761_v6 }
 0x46e   : > { %800 = vmatprep.subr.mxu1 %v760_v38 }
 0x46f   : > { %801 = vmatpush1.msra.mxu1 %v759_v39  ;;  %v758_v40 = vld [vmem:[#allocation2 + $0x10] sm:$0xff]  ;;  %v757_v41 = vld [vmem:[#allocation2 + $0x18] sm:$0xff] }
 0x470   : > { %802 = vmatprep.subr.mxu1 %v758_v40 }
 0x471   : > { %803 = vmatpush1.msra.mxu1 %v757_v41 }
 0x473   : > { %v756_v4 = vld [vmem:[#allocation2] sm:$0xff]  ;;  %v755_v42 = vld [vmem:[#allocation2 + $0x30] sm:$0xff] }
 0x474   : > { %804 = vmatprep.subr.mxu1 %v756_v4 }
 0x475   : > { %805 = vmatpush1.msra.mxu1 %v755_v42 }
 0x476   : > { %976 = vmatmul.mubr.msk.f32.vlgmr.msra.gmra.mxu1 %vm430_vm5, %v201_v43 }
 0x536   : > { %v840_v44 = vpop.f32.mrf.mxu1 }
 0x537   : > { %v851_v45 = vmul.f32 %v840_v44, %v840_v44  ;;  %v845_v49 = vsel %vm434_vm4, %v840_v44, 0.0 }
 0x538   : > { %v842_v46 = vpop.f32.mrf.mxu1 }
 0x539   : > { %v846_v47 = vsel %vm434_vm4, %v842_v46, 0.0  ;;  %v852_v48 = vmul.f32 %v842_v46, %v842_v46  ;;  %v853_v51 = vsel %vm434_vm4, %v851_v45, 0.0 }
 0x53a   : > { %v847_v50 = vadd.f32 %v846_v47, %v845_v49 }
 0x53b   : > { %v854_v52 = vsel %vm434_vm4, %v852_v48, 0.0 }
 0x53c   : > { %848 = vadd.xlane.f32.xlu0 %v847_v50  ;;  %v855_v53 = vadd.f32 %v854_v52, %v853_v51 }
 0x53e   : > { %856 = vadd.xlane.f32.xlu1 %v855_v53 }
 0x5c5   : > { %v849_v55 = vpop.xlane.xlu0 %848 }
 0x5c6   : > { %v850_v56 = vmul.f32 0.00390625, %v849_v55 }
 0x5c7   : > { %v857_v57 = vpop.xlane.xlu1 %856 }
 0x5c8   : > { %v859_v58 = vmul.f32 %v850_v56, %v850_v56  ;;  %v858_v60 = vmul.f32 0.00390625, %v857_v57 }
 0x5ca   : > { %v860_v61 = vsub.f32 %v858_v60, %v859_v58 }
 0x5cc   : > { %v861_v62 = vadd.f32 1e-05, %v860_v61 }
 0x5ce   : > { %1005 = vrsqrt.f32 %v861_v62 }
 0x5db   : > { %v1006_v2 = vpop.eup %1005 }
 0x5dc   : > { %v863_v3 = vmul.f32 %v1006_v2, %v1192_v59 }
 0x5de   : > { %866 = vperm.xlu1 %1000, %v863_v3   ;;  %v871_v7 = vmul.f32 %v863_v3, %v850_v56 }
 0x5e0   : > { %873 = vrot.lane.b32.xlu0 %v871_v7, %s1018_s24  ;;  %s197_s24 = scalar_lea.vmem %s1312_s4, %s979_s17 }
 0x652   : > { %v874_v8 = vpop.permute.xlu0 %873 }
 0x653   : > { %v876_v9 = vsub.f32 %v1192_v59, %v874_v8 }
 0x655   : > { %879 = vperm.xlu0 %1001, %v876_v9  }
 0x659   : > { %v867_v10 = vpop.permute.xlu1 %866 }
 0x65a   : > { %v869_v11 = vmul.f32 %v867_v10, %v840_v44  ;;  %v870_v12 = vmul.f32 %v867_v10, %v842_v46 }
 0x6d0   : > { %v880_v13 = vpop.permute.xlu0 %879 }
 0x6d1   : > { %v882_v14 = vadd.f32 %v880_v13, %v869_v11  ;;  %v883_v15 = vadd.f32 %v880_v13, %v870_v12 }
 0x6d3   : > { %v884_v16 = vadd.f32 %v882_v14, %v1065_v0  ;;  %v885_v17 = vadd.f32 %v883_v15, %v1074_v1 }
 0x6d5   : > { %v886_v18 = vmax.f32 %v884_v16, 0.0  ;;  %v887_v19 = vmax.f32 %v885_v17, 0.0 }
 0x6d7   : > { %v890_v20 = vcombine.low %v886_v18, %v887_v19 }
 0x6d9   : > { %892 = vst [vmem:[%s197_s24] sm:$0xff] %v890_v20 }
 0x6da PF: > { %s14_s15 = sadd.s32 1, %s1013_s15  }
 0x6db   : > { %p11_p4 = scmp.ge.s32.totalorder %s14_s15, 4  }
 0x6dd   :  { %13 = sbr.rel (!%p11_p4) target bundleno = 1 (0x1), region = 73 }

</bundles_post_ra>
